<compile_context>
chip_gen: v7x
topology: tpu7x:2x2x1
jax: 0.10.0
libtpu: 0.0.40
codegen_flags: <defaults>
</compile_context>

<pallas_src>
import jax
import jax.numpy as jnp
from jax.experimental import pallas as pl
from jax.experimental.pallas import tpu as pltpu


def _phase_kernel(spins_ref, out_ref):
    # The reference forward ignores the spin values entirely; spins_ref is an
    # untouched HBM ref (memory_space=pl.ANY), so no data movement happens.
    del spins_ref
    out_ref[...] = jnp.zeros_like(out_ref)


def _round_up(x: int, m: int) -> int:
    return ((x + m - 1) // m) * m


def phase_forward(spins: jax.Array) -> jax.Array:
    """Pallas equivalent of Phase.forward(spins) -> zeros((batch, 1), f32)."""
    batch = spins.shape[0]
    if batch == 0:
        # Guard: empty batch (would otherwise divide by zero in tiling math).
        return jnp.zeros((0, 1), dtype=jnp.float32)

    LANE = 128
    batch_pad = _round_up(batch, LANE)
    rows = batch_pad // LANE  # >= 1

    # Single block for outputs up to 8 MiB (rows <= 16384); otherwise tile the
    # rows in 4 MiB (8192, 128) blocks (sublane multiple of 8, lane dense).
    SINGLE_BLOCK_ROWS = 16384  # 16384 * 128 * 4 B = 8 MiB
    TILE_ROWS = 8192           # 4 MiB per block, 8 MiB double-buffered

    if rows <= SINGLE_BLOCK_ROWS:
        tr = rows              # full-extent dim0 -> always layout-legal
        grid = (1,)
    else:
        tr = TILE_ROWS         # multiple of 8 sublanes; ragged last block OK
        grid = (pl.cdiv(rows, tr),)

    out2d = pl.pallas_call(
        _phase_kernel,
        out_shape=jax.ShapeDtypeStruct((rows, LANE), jnp.float32),
        grid=grid,
        # spins is never read: leave it in place (no auto-DMA, no VMEM use).
        in_specs=[pl.BlockSpec(memory_space=pl.ANY)],
        # Sublane- and lane-dense output tile.
        out_specs=pl.BlockSpec((tr, LANE), lambda i: (i, 0)),
        compiler_params=pltpu.CompilerParams(
            dimension_semantics=("parallel",),
        ),
        cost_estimate=pl.CostEstimate(
            flops=0, transcendentals=0, bytes_accessed=4 * rows * LANE
        ),
    )(spins)

    if batch_pad == batch:
        # Pure reshape (row-major bitcast) — no extra XLA copy kernel.
        return out2d.reshape(batch, 1)
    # Only when batch is not a multiple of 128: slice off the padding.
    return out2d.reshape(batch_pad)[:batch].reshape(batch, 1)


if __name__ == "__main__":
    key = jax.random.PRNGKey(0)
    # Small spin configuration: batch=2, 16 spins (e.g. a 4x4 Heisenberg
    # square lattice flattened), values in {-1, +1}.
    spins = jnp.where(
        jax.random.bernoulli(key, 0.5, (2, 16)), 1.0, -1.0
    ).astype(jnp.float32)

    out = phase_forward(spins)
    out = jax.block_until_ready(out)

    assert out.shape == (2, 1), out.shape
    assert out.dtype == jnp.float32, out.dtype
    assert bool(jnp.all(out == 0.0)), out

    print("KERNEL_OK")
</pallas_src>

<mosaic_0001>
module attributes {stable_mosaic.version = 11 : i64} {
  func.func @_phase_kernel(%arg0: i32, %arg1: memref<2x16xf32, #tpu.memory_space<any>>, %arg2: memref<1x128xf32, #tpu.memory_space<vmem>>) attributes {dimension_semantics = [#tpu.dimension_semantics<parallel>], iteration_bounds = array<i64: 1>, scalar_prefetch = 0 : i64, scratch_operands = 0 : i64, tpu.core_type = #tpu.core_type<tc>, window_params = [{}, {transform_indices = @transform_1, window_bounds = array<i64: 1, 128>}]} {
    %cst = arith.constant 0.000000e+00 : f32
    %0 = vector.broadcast %cst : f32 to vector<1x128xf32>
    %c0 = arith.constant 0 : index
    %c0_0 = arith.constant 0 : index
    %1 = vector.load %arg2[%c0, %c0_0] : memref<1x128xf32, #tpu.memory_space<vmem>>, vector<1x128xf32>
    tpu.vector_store %arg2[%c0, %c0_0], %0 {strides = array<i32>} : memref<1x128xf32, #tpu.memory_space<vmem>>, vector<1x128xf32>,
    return
  }
  func.func @transform_1(%arg0: i32) -> (i32, i32) {
    %c0_i32 = arith.constant 0 : i32
    %c0_i32_0 = arith.constant 0 : i32
    return %arg0, %c0_i32 : i32, i32
  }
}

</mosaic_0001>

<bundles_post_ra>
// kernel: tpu_custom_call.1
= control target key start
LH: loop header
LB: loop body
LE: loop exit
PB: predicated region body
PF: predicated region fallthrough
CT: control target
= control target key end

     0   :  { %6 = vsyncpa [#allocation3], 0  ;;  %v48_v0 = vmov 0.0   ;;  %s49_s6 = smov [#allocation2]   ;;  %s72_s0 = inlined_call_operand.hbm [shape: f32[2,16], index: 0, kind: input, shape index: {}]   ;;  %s73_s1 = inlined_call_operand.hbm [shape: f32[1,128], index: 1, kind: output, shape index: {}]  }
   0x1   :  { %7 = vst [vmem:[#allocation2] sm:$0x1] %v48_v0  ;;  %s14_s7 = sshll.u32 %s49_s6, 4  ;;  %s15_s7 = int_to_ptr.vmem [resolvable:$true] %s14_s7 }
   0x2   :  { %s24_s8 = scalar_lea.vmem %s15_s7, 16  ;;  %s28_s9 = scalar_lea.vmem %s15_s7, 32 }
   0x3   :  { %p25_p0 = scmp.ne.s32.totalorder %s15_s7, %s24_s8  ;;  %p29_p1 = scmp.lt.s32.totalorder %s15_s7, %s15_s7 }
   0x4   :  { %p30_p2 = scmp.lt.s32.totalorder %s28_s9, %s24_s8 }
   0x6   :  { %p31_p3 = por %p30_p2, %p29_p1 }
   0x8   :  { %p32_p4 = pnand %p31_p3, %p25_p0 }
   0xa   :  { %35 = shalt.err (!%p32_p4)
}
   0xb   :  { %s36_s0 = scalar_lea.hbm %s73_s1, 16 }
   0xc   :  { %p37_p5 = scmp.ne.s32.totalorder %s73_s1, %s36_s0  ;;  %p40_p6 = scmp.lt.u32.totalorder %s36_s0, %s73_s1 }
   0xe   :  { %p42_p7 = pnand %p40_p6, %p37_p5 }
  0x10   :  { %45 = shalt.err (!%p42_p7)
}
  0x11   :  { %17 = dma.vmem_to_hbm [thread:$0]  %s15_s7, 16, %s73_s1, [#allocation3]  }
  0x12   :  { %46 = dma.done.wait [#allocation3], 16  }
  0x13   :  { %47 = vsyncadd [#allocation3], 4294967280 }
  0x14   :  { %21 = vsyncpa [#allocation3], 1 }

</bundles_post_ra>
